<compile_context>
chip_gen: v7x
topology: tpu7x:2x2x1
jax: 0.10.0
libtpu: 0.0.40
codegen_flags: <defaults>
</compile_context>

<pallas_src>
import math

import jax
import jax.numpy as jnp
from jax.experimental import pallas as pl
from jax.experimental.pallas import tpu as pltpu

_BLOCK_BUDGET = 2 * 1024 * 1024     # bytes per VMEM block (per GLU half)
_VMEM_LIMIT = 32 * 1024 * 1024      # scoped-VMEM request (safe on v5e/v6e/v7x)


def _glu_split_kernel(a_ref, g_ref, o_ref):
    # a_ref, g_ref, o_ref: (tile_p, tile_c) — two aligned half-blocks in, one out.
    gate = jax.nn.sigmoid(g_ref[...].astype(jnp.float32))   # exp on EUP, f32
    o_ref[...] = a_ref[...] * gate.astype(o_ref.dtype)      # multiply in input dtype


def _glu_fused_kernel(x_ref, o_ref):
    # Fallback (half-width not a multiple of 128): x_ref (tile_p, 2C), o_ref (tile_p, C).
    c = o_ref.shape[-1]
    x = x_ref[...]
    gate = jax.nn.sigmoid(x[:, c:].astype(jnp.float32))
    o_ref[...] = x[:, :c] * gate.astype(o_ref.dtype)


def _sublane(dtype):
    # 8 rows for 32-bit, 16 for 16-bit, 32 for 8-bit dtypes.
    return max(8, 32 // jnp.dtype(dtype).itemsize)


def _choose_tiles(P, C, itemsize, sub, budget=_BLOCK_BUDGET):
    """Pick (tile_p, tile_c): tile_c divides C and is a multiple of 128;
    tile_p is a multiple of the sublane granularity (or the full P)."""
    if sub * C * itemsize <= budget:
        tile_c = C
    else:
        max_c = max(128, budget // (sub * itemsize))
        m = C // 128
        best = 1
        for k in range(1, m + 1):
            if m % k == 0 and 128 * k <= max_c:
                best = k
        tile_c = 128 * best
    rows = budget // (tile_c * itemsize)
    tile_p = max(sub, (rows // sub) * sub)
    return min(tile_p, P), tile_c


def _choose_rows(P, row_bytes, sub, budget=_BLOCK_BUDGET):
    rows = max(1, budget // max(row_bytes, 1))
    tile_p = max(sub, (rows // sub) * sub)
    return min(tile_p, P)


def glu_forward(x, dim=-1):
    """GLU: chunk `x` in two along `dim`, return first_half * sigmoid(second_half)."""
    nd = x.ndim
    dim = dim % nd
    shape = x.shape
    two_d = shape[dim]
    assert two_d % 2 == 0, "GLU split dimension must be even"
    d = two_d // 2

    P = math.prod(shape[:dim])            # leading (row) axes
    Q = math.prod(shape[dim + 1:])        # trailing axes
    C = d * Q                             # contiguous elements per half, per row
    out_shape = shape[:dim] + (d,) + shape[dim + 1:]
    itemsize = jnp.dtype(x.dtype).itemsize
    sub = _sublane(x.dtype)

    x2 = x.reshape(P, 2 * C)              # free view: [a-half | gate-half] per row

    if C % 128 == 0:
        # Aligned path: feed the two halves as two lane-aligned BlockSpecs over
        # the same array (no in-kernel slicing), tile rows and lanes.
        tile_p, tile_c = _choose_tiles(P, C, itemsize, sub)
        nc = C // tile_c
        grid = (pl.cdiv(P, tile_p), nc)
        out = pl.pallas_call(
            _glu_split_kernel,
            out_shape=jax.ShapeDtypeStruct((P, C), x.dtype),
            grid=grid,
            in_specs=[
                pl.BlockSpec((tile_p, tile_c), lambda i, j: (i, j)),           # a half
                pl.BlockSpec((tile_p, tile_c), lambda i, j: (i, j + nc)),      # gate half
            ],
            out_specs=pl.BlockSpec((tile_p, tile_c), lambda i, j: (i, j)),
            compiler_params=pltpu.CompilerParams(
                dimension_semantics=("parallel", "parallel"),
                vmem_limit_bytes=_VMEM_LIMIT),
        )(x2, x2)
    else:
        # Fallback (small / non-128-multiple half widths): one block per row
        # tile, slice the two halves inside the kernel.
        # TODO(synk): lane-dense regrouping of narrow outputs (k*d multiple of
        # 128) could lift masked-store utilization for large P with tiny d.
        tile_p = _choose_rows(P, 2 * C * itemsize, sub)
        grid = (pl.cdiv(P, tile_p),)
        out = pl.pallas_call(
            _glu_fused_kernel,
            out_shape=jax.ShapeDtypeStruct((P, C), x.dtype),
            grid=grid,
            in_specs=[pl.BlockSpec((tile_p, 2 * C), lambda i: (i, 0))],
            out_specs=pl.BlockSpec((tile_p, C), lambda i: (i, 0)),
            compiler_params=pltpu.CompilerParams(
                dimension_semantics=("parallel",),
                vmem_limit_bytes=_VMEM_LIMIT),
        )(x2)

    return out.reshape(out_shape)


def _reference(x, dim=-1):
    a, b = jnp.split(x, 2, axis=dim)
    return a * jax.nn.sigmoid(b)


if __name__ == "__main__":
    key = jax.random.PRNGKey(0)
    k0, k1, k2 = jax.random.split(key, 3)

    # 1) Channels-last usage: (batch, seq, hidden) with hidden = 2*16, GLU over dim=-1.
    #    (half-width 16 < 128 -> exercises the fallback path)
    x = jax.random.normal(k0, (2, 8, 32), dtype=jnp.float32)
    out = jax.block_until_ready(glu_forward(x, dim=-1))
    ref = _reference(x, dim=-1)
    assert out.shape == (2, 8, 16), out.shape
    assert jnp.allclose(out, ref, atol=1e-5, rtol=1e-5), "mismatch vs reference (dim=-1)"

    # 2) Channels-first usage (Conformer conv module): GLU(dim=1) on (B, 2C, L).
    #    (C = 16*16 = 256 -> exercises the aligned two-BlockSpec path)
    x_cf = jax.random.normal(k1, (2, 32, 16), dtype=jnp.float32)
    out_cf = jax.block_until_ready(glu_forward(x_cf, dim=1))
    ref_cf = _reference(x_cf, dim=1)
    assert out_cf.shape == (2, 16, 16), out_cf.shape
    assert jnp.allclose(out_cf, ref_cf, atol=1e-5, rtol=1e-5), "mismatch vs reference (dim=1)"

    # 3) bf16, aligned path with 128-wide halves (16-row sublane rounding).
    x_bf = jax.random.normal(k2, (2, 8, 256), dtype=jnp.float32).astype(jnp.bfloat16)
    out_bf = jax.block_until_ready(glu_forward(x_bf, dim=-1))
    ref_bf = _reference(x_bf, dim=-1)
    assert out_bf.shape == (2, 8, 128), out_bf.shape
    assert jnp.allclose(out_bf.astype(jnp.float32), ref_bf.astype(jnp.float32),
                        atol=2e-2, rtol=2e-2), "mismatch vs reference (bf16)"

    print("KERNEL_OK")
</pallas_src>

<mosaic_0001>
module attributes {stable_mosaic.version = 11 : i64} {
  func.func @_glu_fused_kernel(%arg0: i32, %arg1: memref<16x32xf32, #tpu.memory_space<vmem>>, %arg2: memref<16x16xf32, #tpu.memory_space<vmem>>) attributes {dimension_semantics = [#tpu.dimension_semantics<parallel>], iteration_bounds = array<i64: 1>, scalar_prefetch = 0 : i64, scratch_operands = 0 : i64, tpu.core_type = #tpu.core_type<tc>, window_params = [{transform_indices = @transform_0, window_bounds = array<i64: 16, 32>}, {transform_indices = @transform_1, window_bounds = array<i64: 16, 16>}]} {
    %c0 = arith.constant 0 : index
    %c0_0 = arith.constant 0 : index
    %0 = vector.load %arg1[%c0, %c0_0] : memref<16x32xf32, #tpu.memory_space<vmem>>, vector<16x32xf32>
    %1 = vector.extract_strided_slice %0 {offsets = [0, 16], sizes = [16, 16], strides = [1, 1]} : vector<16x32xf32> to vector<16x16xf32>
    %2 = arith.negf %1 : vector<16x16xf32>
    %3 = math.exp %2 : vector<16x16xf32>
    %cst = arith.constant 1.000000e+00 : f32
    %4 = vector.broadcast %cst : f32 to vector<16x16xf32>
    %5 = arith.addf %4, %3 : vector<16x16xf32>
    %6 = arith.divf %4, %5 : vector<16x16xf32>
    %7 = vector.extract_strided_slice %0 {offsets = [0, 0], sizes = [16, 16], strides = [1, 1]} : vector<16x32xf32> to vector<16x16xf32>
    %8 = arith.mulf %7, %6 : vector<16x16xf32>
    %c0_1 = arith.constant 0 : index
    %c0_2 = arith.constant 0 : index
    %9 = vector.load %arg2[%c0_1, %c0_2] : memref<16x16xf32, #tpu.memory_space<vmem>>, vector<16x16xf32>
    tpu.vector_store %arg2[%c0_1, %c0_2], %8 {strides = array<i32>} : memref<16x16xf32, #tpu.memory_space<vmem>>, vector<16x16xf32>,
    return
  }
  func.func @transform_0(%arg0: i32) -> (i32, i32) {
    %c0_i32 = arith.constant 0 : i32
    %c0_i32_0 = arith.constant 0 : i32
    return %arg0, %c0_i32 : i32, i32
  }
  func.func @transform_1(%arg0: i32) -> (i32, i32) {
    %c0_i32 = arith.constant 0 : i32
    %c0_i32_0 = arith.constant 0 : i32
    return %arg0, %c0_i32 : i32, i32
  }
}

</mosaic_0001>

<bundles_post_ra>
// kernel: tpu_custom_call.1
= control target key start
LH: loop header
LB: loop body
LE: loop exit
PB: predicated region body
PF: predicated region fallthrough
CT: control target
= control target key end

     0   :  { %6 = vsyncpa [#allocation3], 0  ;;  %s175_s0 = inlined_call_operand.hbm [shape: f32[16,32], index: 0, kind: input, shape index: {}]   ;;  %s176_s1 = inlined_call_operand.hbm [shape: f32[16,16], index: 1, kind: output, shape index: {}]  }
   0x1   :  { %7 = vsyncpa [#allocation4], 0  ;;  %s130_s6 = smov [#allocation2]   ;;  %s82_s10 = scalar_lea.hbm %s175_s0, 256 }
   0x2   :  { %s13_s7 = sshll.u32 %s130_s6, 4  ;;  %p83_p0 = scmp.ne.s32.totalorder %s175_s0, %s82_s10  ;;  %s14_s7 = int_to_ptr.vmem [resolvable:$true] %s13_s7 }
   0x3   :  { %p86_p1 = scmp.lt.u32.totalorder %s82_s10, %s175_s0 }
   0x5   :  { %p88_p2 = pnand %p86_p1, %p83_p0 }
   0x7   :  { %91 = shalt.err (!%p88_p2)
}
   0x8   :  { %s92_s15 = scalar_lea.vmem %s14_s7, 256  ;;  %p97_p4 = scmp.lt.s32.totalorder %s14_s7, %s14_s7 }
   0x9   :  { %p93_p3 = scmp.ne.s32.totalorder %s14_s7, %s92_s15  ;;  %p98_p5 = scmp.lt.s32.totalorder %s92_s15, %s92_s15 }
   0xb   :  { %p99_p6 = por %p98_p5, %p97_p4 }
   0xd   :  { %p100_p7 = pnand %p99_p6, %p93_p3 }
   0xf   :  { %103 = shalt.err (!%p100_p7)
}
  0x10   :  { %s131_s16 = smov 128   ;;  %s132_s17 = smov 8  }
  0x11   :  { %19 = dma.hbm_to_vmem [thread:$0]  %s175_s0, 256, %s14_s7, [#allocation3], %s131_s16, %s131_s16, %s132_s17  }
  0x12   :  { %126 = dma.done.wait [#allocation3], 256  }
  0x13   :  { %127 = vsyncadd [#allocation3], 4294967040  ;;  %v23_v0 = vld [vmem:[#allocation2] sm:$0xff]  ;;  %v24_v1 = vld [vmem:[#allocation2 + $0x8] sm:$0xff]  ;;  %s133_s20 = smov 112   ;;  %vm47_vm0 = vcmask 130048  }
  0x14   :  { %v67_v2 = vmul.f32 -1.442695, %v23_v0  ;;  %v68_v3 = vmul.f32 -1.442695, %v24_v1  ;;  %s134_s0 = smov [#allocation5]  }
  0x15   :  { %s55_s21 = sshll.u32 %s134_s0, 4  ;;  %s56_s21 = int_to_ptr.vmem [resolvable:$true] %s55_s21 }
  0x16   :  { %74 = vpow2.f32 %v67_v2  ;;  %s104_s22 = scalar_lea.vmem %s56_s21, 256  ;;  %p109_p9 = scmp.lt.s32.totalorder %s56_s21, %s56_s21 }
  0x17   :  { %76 = vpow2.f32 %v68_v3  ;;  %p105_p8 = scmp.ne.s32.totalorder %s56_s21, %s104_s22  ;;  %p110_p10 = scmp.lt.s32.totalorder %s104_s22, %s104_s22 }
  0x19   :  { %p111_p11 = por %p110_p10, %p109_p9 }
  0x1b   :  { %p112_p12 = pnand %p111_p11, %p105_p8 }
  0x20   :  { %v75_v4 = vpop.eup %74 }
  0x21   :  { %v77_v5 = vpop.eup %76  ;;  %v31_v6 = vadd.f32 1.0, %v75_v4 }
  0x22   :  { %v32_v7 = vadd.f32 1.0, %v77_v5 }
  0x23   :  { %78 = vrcp.f32 %v31_v6 }
  0x24   :  { %80 = vrcp.f32 %v32_v7 }
  0x2d   :  { %v79_v8 = vpop.eup %78 }
  0x2e   :  { %39 = vrot.lane.b32.xlu0 %v79_v8, %s133_s20  ;;  %v81_v9 = vpop.eup %80 }
  0x32   :  { %41 = vrot.lane.b32.xlu0 %v81_v9, %s133_s20 }
  0xa0   :  { %v40_v10 = vpop.permute.xlu0 %39 }
  0xa1   :  { %v45_v11 = vmul.f32 %v40_v10, %v23_v0 }
  0xa3   :  { %48 = vst.msk [vmem:[#allocation5] sm:$0xff] %vm47_vm0, %v45_v11 }
  0xa4   :  { %v42_v12 = vpop.permute.xlu0 %41 }
  0xa5   :  { %v46_v13 = vmul.f32 %v42_v12, %v24_v1 }
  0xa7   :  { %49 = vst.msk [vmem:[#allocation5 + $0x8] sm:$0xff] %vm47_vm0, %v46_v13 }
  0xa8   :  { %115 = shalt.err (!%p112_p12)
}
  0xa9   :  { %s116_s25 = scalar_lea.hbm %s176_s1, 256 }
  0xaa   :  { %p117_p13 = scmp.ne.s32.totalorder %s176_s1, %s116_s25  ;;  %p120_p0 = scmp.lt.u32.totalorder %s116_s25, %s176_s1 }
  0xac   :  { %p122_p1 = pnand %p120_p0, %p117_p13 }
  0xae   :  { %125 = shalt.err (!%p122_p1)
}
  0xaf   :  { %61 = dma.vmem_to_hbm [thread:$0]  %s56_s21, 256, %s176_s1, [#allocation4], %s131_s16, %s131_s16, %s132_s17  }
  0xb0   :  { %128 = dma.done.wait [#allocation4], 256  }
  0xb1   :  { %129 = vsyncadd [#allocation4], 4294967040 }
  0xb2   :  { %65 = vsyncpa [#allocation3], 1 }
  0xb3   :  { %66 = vsyncpa [#allocation4], 1 }

</bundles_post_ra>
